<compile_context>
chip_gen: v7x
topology: tpu7x:2x2x1
jax: 0.10.0
libtpu: 0.0.40
codegen_flags: <defaults>
</compile_context>

<pallas_src>
import functools

import numpy as np
import jax
import jax.numpy as jnp
from jax.experimental import pallas as pl
from jax.experimental.pallas import tpu as pltpu


def _next_greater_power_of_2(x):
    return 2 ** (x - 1).bit_length()


def _round_up(a, b):
    return ((a + b - 1) // b) * b


# ---------------------------------------------------------------------------
# torchaudio-compatible mel filterbank (HTK scale, norm=None) -- host numpy
# ---------------------------------------------------------------------------
def _hz_to_mel(f):
    return 2595.0 * np.log10(1.0 + np.asarray(f, dtype=np.float64) / 700.0)


def _mel_to_hz(m):
    return 700.0 * (10.0 ** (np.asarray(m, dtype=np.float64) / 2595.0) - 1.0)


def melscale_fbanks(n_freqs, f_min, f_max, n_mels, sample_rate):
    all_freqs = np.linspace(0.0, sample_rate // 2, n_freqs)
    m_pts = np.linspace(_hz_to_mel(f_min), _hz_to_mel(f_max), n_mels + 2)
    f_pts = _mel_to_hz(m_pts)
    f_diff = f_pts[1:] - f_pts[:-1]                      # (n_mels + 1,)
    slopes = f_pts[None, :] - all_freqs[:, None]         # (n_freqs, n_mels + 2)
    down = (-1.0 * slopes[:, :-2]) / f_diff[:-1]
    up = slopes[:, 2:] / f_diff[1:]
    fb = np.maximum(0.0, np.minimum(down, up))
    return fb                                            # float64 (n_freqs, n_mels)


# ---------------------------------------------------------------------------
# Pallas kernels
# ---------------------------------------------------------------------------
def _mel_kernel(x_ref, w_ref, re_ref, im_ref, *, n_pad):
    # x_ref: (tm, k) input dtype; w_ref: (k, 2*n_pad) bf16.
    # One fused MXU pass with f32 accumulation; split at a 128-aligned column
    # (no tile-boundary crossing -> no VMEM copy for the slices).
    x = x_ref[...].astype(jnp.bfloat16)          # VPU cast, hidden under MXU/DMA
    y = jnp.dot(x, w_ref[...], preferred_element_type=jnp.float32)
    re_ref[...] = y[:, :n_pad]
    im_ref[...] = y[:, n_pad:]


def _mel_phase_kernel(x_ref, w_ref, ang_ref, *, n_pad):
    x = x_ref[...].astype(jnp.bfloat16)
    y = jnp.dot(x, w_ref[...], preferred_element_type=jnp.float32)
    ang_ref[...] = jnp.arctan2(y[:, n_pad:], y[:, :n_pad])   # torch.angle


# ---------------------------------------------------------------------------
# Module wrapper
# ---------------------------------------------------------------------------
class MelSpectra:
    """Pallas TPU port of the PyTorch MelSpectra module."""

    # VMEM budget for the pipelined working set (double-buffered tiles).
    _VMEM_BUDGET = 12 * 1024 * 1024

    def __init__(self, sample_rate=16000, n_dft=512, f_min=0.0, f_max=None,
                 n_mels=128, phase_only=False):
        self.sample_rate = sample_rate
        self.n_dft = _next_greater_power_of_2(n_dft)
        self.f_min = float(f_min)
        self.f_max = float(f_max) if f_max is not None else float(sample_rate // 2)
        self.n_mels = n_mels
        self.phase_only = phase_only
        self.n_freq = self.n_dft // 2 + 1
        # Lane-dense output width (multiple of 128).
        self.n_pad = max(128, _round_up(n_mels, 128))
        # Analytic mel filterbank (f64 for weight folding, f32 copy for reference).
        self._fb64 = melscale_fbanks(self.n_freq, self.f_min, self.f_max,
                                     n_mels, sample_rate)
        self.fb = jnp.asarray(self._fb64.astype(np.float32))
        self._w_cache = {}   # k_size -> fused bf16 weight matrix

    # ------------------------------------------------------------------
    def _fused_weights(self, k_size):
        """W = [cos @ fb | (-sin) @ fb], zero-padded to (k_size, 2*n_pad), bf16."""
        w = self._w_cache.get(k_size)
        if w is None:
            n = np.arange(k_size, dtype=np.float64)[:, None]
            k = np.arange(self.n_freq, dtype=np.float64)[None, :]
            ang = 2.0 * np.pi * n * k / self.n_dft
            w_re = np.cos(ang) @ self._fb64               # (k_size, n_mels)
            w_im = (-np.sin(ang)) @ self._fb64
            wf = np.zeros((k_size, 2 * self.n_pad), dtype=np.float32)
            wf[:, : self.n_mels] = w_re
            wf[:, self.n_pad: self.n_pad + self.n_mels] = w_im
            w = jnp.asarray(wf).astype(jnp.bfloat16)
            self._w_cache[k_size] = w
        return w

    def _pick_tile(self, rows, k_size, itemsize):
        """Row tile: multiple of 8, >=2 grid steps when possible, <25% padding
        waste, and the double-buffered working set fits the VMEM budget."""
        def working_set(t):
            x_b = 2 * t * k_size * itemsize                 # input, double buffered
            o_b = 2 * 2 * t * self.n_pad * 4                # two f32 outputs, 2 bufs
            w_b = 2 * k_size * 2 * self.n_pad * 2           # resident bf16 weights
            return x_b + o_b + w_b

        tm = 1024
        while tm > 8 and rows < 2 * tm:
            tm //= 2
        while tm > 8 and (_round_up(rows, tm) - rows) * 4 > rows:
            tm //= 2
        while tm > 8 and working_set(tm) > self._VMEM_BUDGET:
            tm //= 2
        return tm

    # ------------------------------------------------------------------
    def __call__(self, x):
        B, F, M, frame_size = x.shape
        # torch.fft.rfft(x, n=n_dft): zero-pad if shorter, truncate if longer.
        k_size = min(frame_size, self.n_dft)
        rows = B * F * M
        n_pad = self.n_pad

        x2d = x.reshape(rows, frame_size)                  # metadata-only reshape
        if k_size != frame_size:
            x2d = x2d[:, :k_size]                          # rfft truncation path

        tm = self._pick_tile(rows, k_size, x2d.dtype.itemsize)
        rows_p = _round_up(rows, tm)
        if rows_p != rows:
            x2d = jnp.pad(x2d, ((0, rows_p - rows), (0, 0)))

        w = self._fused_weights(k_size)

        grid = (rows_p // tm,)
        in_specs = [
            pl.BlockSpec((tm, k_size), lambda i: (i, 0)),
            pl.BlockSpec((k_size, 2 * n_pad), lambda i: (0, 0)),  # resident weights
        ]
        out_block = pl.BlockSpec((tm, n_pad), lambda i: (i, 0))
        cparams = pltpu.CompilerParams(
            dimension_semantics=("parallel",),
            vmem_limit_bytes=32 * 1024 * 1024,
        )

        flops = 2 * rows_p * k_size * (2 * n_pad)
        base_bytes = (rows_p * k_size * x2d.dtype.itemsize
                      + k_size * 2 * n_pad * 2)

        def _crop(a):
            if rows_p != rows:
                a = a[:rows]
            if self.n_mels != n_pad:
                a = a[:, : self.n_mels]
            return a.reshape(B, F, M, self.n_mels)

        if self.phase_only:
            ang = pl.pallas_call(
                functools.partial(_mel_phase_kernel, n_pad=n_pad),
                out_shape=jax.ShapeDtypeStruct((rows_p, n_pad), jnp.float32),
                grid=grid, in_specs=in_specs, out_specs=out_block,
                compiler_params=cparams,
                cost_estimate=pl.CostEstimate(
                    flops=flops,
                    transcendentals=rows_p * n_pad,
                    bytes_accessed=base_bytes + rows_p * n_pad * 4),
            )(x2d, w)
            return _crop(ang)

        re, im = pl.pallas_call(
            functools.partial(_mel_kernel, n_pad=n_pad),
            out_shape=(jax.ShapeDtypeStruct((rows_p, n_pad), jnp.float32),
                       jax.ShapeDtypeStruct((rows_p, n_pad), jnp.float32)),
            grid=grid, in_specs=in_specs, out_specs=(out_block, out_block),
            compiler_params=cparams,
            cost_estimate=pl.CostEstimate(
                flops=flops,
                transcendentals=0,
                bytes_accessed=base_bytes + 2 * rows_p * n_pad * 4),
        )(x2d, w)
        return jax.lax.complex(_crop(re), _crop(im))


# ---------------------------------------------------------------------------
# Pure-JAX reference (uses jnp.fft.rfft) for validation
# ---------------------------------------------------------------------------
def reference(x, mod: MelSpectra):
    xf = jnp.fft.rfft(x.astype(jnp.float32), n=mod.n_dft, axis=-1)  # (B,F,M,n_freq)
    mre = jnp.einsum('bfmk,kn->bfmn', jnp.real(xf), mod.fb)
    mim = jnp.einsum('bfmk,kn->bfmn', jnp.imag(xf), mod.fb)
    if mod.phase_only:
        return jnp.arctan2(mim, mre)
    return jax.lax.complex(mre, mim)


if __name__ == "__main__":
    key = jax.random.PRNGKey(0)
    B, F, M, T = 2, 8, 4, 64          # batch, n_frames, n_mics, frame_size
    x = jax.random.normal(key, (B, F, M, T), dtype=jnp.float32)

    # Complex-spectra path (frame_size == n_dft).
    mod = MelSpectra(sample_rate=16000, n_dft=64, n_mels=16, phase_only=False)
    out = jax.block_until_ready(mod(x))
    assert out.shape == (B, F, M, mod.n_mels), out.shape
    assert out.dtype == jnp.complex64, out.dtype
    ref = reference(x, mod)
    err = float(jnp.max(jnp.abs(out - ref)))
    scale = float(jnp.max(jnp.abs(ref)))
    assert err < 2e-2 * scale + 1e-4, (err, scale)

    # rfft zero-padding path (frame_size < n_dft) + complex output.
    mod_pad = MelSpectra(sample_rate=16000, n_dft=128, n_mels=16, phase_only=False)
    out_pad = jax.block_until_ready(mod_pad(x))
    ref_pad = reference(x, mod_pad)
    err = float(jnp.max(jnp.abs(out_pad - ref_pad)))
    scale = float(jnp.max(jnp.abs(ref_pad)))
    assert err < 2e-2 * scale + 1e-4, (err, scale)

    # Phase-only path: light checks (phase is ill-conditioned near zero magnitude).
    mod_ph = MelSpectra(sample_rate=16000, n_dft=64, n_mels=16, phase_only=True)
    ang = jax.block_until_ready(mod_ph(x))
    assert ang.shape == (B, F, M, mod_ph.n_mels), ang.shape
    assert ang.dtype == jnp.float32, ang.dtype
    assert bool(jnp.all(jnp.isfinite(ang)))
    assert bool(jnp.all(jnp.abs(ang) <= jnp.pi + 1e-5))

    print("KERNEL_OK")
</pallas_src>

<mosaic_0001>
module attributes {stable_mosaic.version = 11 : i64} {
  func.func @_mel_kernel(%arg0: i32, %arg1: memref<32x64xf32, #tpu.memory_space<vmem>>, %arg2: memref<64x256xbf16, #tpu.memory_space<vmem>>, %arg3: memref<32x128xf32, #tpu.memory_space<vmem>>, %arg4: memref<32x128xf32, #tpu.memory_space<vmem>>) attributes {dimension_semantics = [#tpu.dimension_semantics<parallel>], iteration_bounds = array<i64: 2>, scalar_prefetch = 0 : i64, scratch_operands = 0 : i64, tpu.core_type = #tpu.core_type<tc>, window_params = [{transform_indices = @transform_0, window_bounds = array<i64: 32, 64>}, {pipeline_mode = #tpu.pipeline_mode<synchronous>, transform_indices = @transform_1, window_bounds = array<i64: 64, 256>}, {transform_indices = @transform_2, window_bounds = array<i64: 32, 128>}, {transform_indices = @transform_3, window_bounds = array<i64: 32, 128>}]} {
    %c0 = arith.constant 0 : index
    %c0_0 = arith.constant 0 : index
    %0 = vector.load %arg1[%c0, %c0_0] : memref<32x64xf32, #tpu.memory_space<vmem>>, vector<32x64xf32>
    %1 = arith.truncf %0 : vector<32x64xf32> to vector<32x64xbf16>
    %c0_1 = arith.constant 0 : index
    %c0_2 = arith.constant 0 : index
    %2 = vector.load %arg2[%c0_1, %c0_2] : memref<64x256xbf16, #tpu.memory_space<vmem>>, vector<64x256xbf16>
    %cst = arith.constant dense<0.000000e+00> : vector<32x256xf32>
    %3 = tpu.matmul %1, %2, %cst {dimension_numbers = #tpu.dot_dimension_numbers<[1], [0], [0], [1], [0, 0, 1, 1], [], []>} : vector<32x64xbf16>, vector<64x256xbf16>, vector<32x256xf32> -> vector<32x256xf32>
    %4 = vector.extract_strided_slice %3 {offsets = [0, 0], sizes = [32, 128], strides = [1, 1]} : vector<32x256xf32> to vector<32x128xf32>
    %c0_3 = arith.constant 0 : index
    %c0_4 = arith.constant 0 : index
    %5 = vector.load %arg3[%c0_3, %c0_4] : memref<32x128xf32, #tpu.memory_space<vmem>>, vector<32x128xf32>
    tpu.vector_store %arg3[%c0_3, %c0_4], %4 {strides = array<i32>} : memref<32x128xf32, #tpu.memory_space<vmem>>, vector<32x128xf32>,
    %6 = vector.extract_strided_slice %3 {offsets = [0, 128], sizes = [32, 128], strides = [1, 1]} : vector<32x256xf32> to vector<32x128xf32>
    %c0_5 = arith.constant 0 : index
    %c0_6 = arith.constant 0 : index
    %7 = vector.load %arg4[%c0_5, %c0_6] : memref<32x128xf32, #tpu.memory_space<vmem>>, vector<32x128xf32>
    tpu.vector_store %arg4[%c0_5, %c0_6], %6 {strides = array<i32>} : memref<32x128xf32, #tpu.memory_space<vmem>>, vector<32x128xf32>,
    return
  }
  func.func @transform_0(%arg0: i32) -> (i32, i32) {
    %c0_i32 = arith.constant 0 : i32
    %c0_i32_0 = arith.constant 0 : i32
    return %arg0, %c0_i32 : i32, i32
  }
  func.func @transform_1(%arg0: i32) -> (i32, i32) {
    %c0_i32 = arith.constant 0 : i32
    %c0_i32_0 = arith.constant 0 : i32
    %c0_i32_1 = arith.constant 0 : i32
    return %c0_i32, %c0_i32_0 : i32, i32
  }
  func.func @transform_2(%arg0: i32) -> (i32, i32) {
    %c0_i32 = arith.constant 0 : i32
    %c0_i32_0 = arith.constant 0 : i32
    return %arg0, %c0_i32 : i32, i32
  }
  func.func @transform_3(%arg0: i32) -> (i32, i32) {
    %c0_i32 = arith.constant 0 : i32
    %c0_i32_0 = arith.constant 0 : i32
    return %arg0, %c0_i32 : i32, i32
  }
}

</mosaic_0001>

<bundles_post_ra>
// kernel: tpu_custom_call.1
= control target key start
LH: loop header
LB: loop body
LE: loop exit
PB: predicated region body
PF: predicated region fallthrough
CT: control target
= control target key end

     0   :  { %9 = vsyncpa [#allocation3], 0  ;;  %s1057_s0 = inlined_call_operand.hbm [shape: f32[64,64], index: 0, kind: input, shape index: {}]   ;;  %s1058_s1 = inlined_call_operand.hbm [shape: bf16[64,256], index: 1, kind: input, shape index: {}]   ;;  %s1059_s2 = inlined_call_operand.hbm [shape: f32[64,128], index: 2, kind: output, shape index: {0}]   ;;  %s1060_s3 = inlined_call_operand.hbm [shape: f32[64,128], index: 3, kind: output, shape index: {1}]  }
   0x1   :  { %11 = vsyncpa [#allocation3 + $0x1], 0 }
   0x2   :  { %12 = vsyncpa [#allocation6], 0 }
   0x3   :  { %13 = vsyncpa [#allocation4], 0 }
   0x4   :  { %15 = vsyncpa [#allocation4 + $0x1], 0 }
   0x5   :  { %16 = vsyncpa [#allocation9], 0 }
   0x6   :  { %18 = vsyncpa [#allocation9 + $0x1], 0  ;;  %s802_s12 = smov 0   ;;  %s804_s13 = smov 0  }
   0x7   :  { %s806_s14 = smov 0   ;;  %s808_s15 = smov 0  }
   0x8 LB: > { %s823_s16 = sadd.s32 4294967295, %s771_s15   ;;  %s491_s17 = sadd.s32 4294967294, %s771_s15   ;;  %s771_s15 = sphi %s808_s15, %s1080_s15   ;;  %s767_s14 = sphi %s806_s14, %s1079_s14   ;;  %s763_s13 = sphi %s804_s13, %s1078_s13   ;;  %s759_s12 = sphi %s802_s12, %s1077_s12  }
   0x9   : > { %p44_p0 = scmp.ne.s32.totalorder %s763_s13, %s759_s12  ;;  %p1061_p1 = scmp.eq.s32.totalorder %s823_s16, 0 }
   0xa   : > { %p95_p3 = scmp.eq.s32.totalorder %s491_s17, 1  ;;  %p492_p5 = scmp.ge.s32.totalorder %s771_s15, 1 }
   0xb   : > { %p832_p4 = por %p1061_p1, %p44_p0  ;;  %p128_p7 = scmp.lt.s32.totalorder %s771_s15, 3 }
   0xc   : > { %p837_p6 = por %p95_p3, %p44_p0  ;;  %s773_s21 = smov [#allocation5]  }
   0xd   : > { %s1064_s18 = scalar_select %p832_p4, 1, 0 }
   0xe   : > { %s1065_s19 = scalar_select %p837_p6, 1, 0 }
   0xf   : > { %p842_p8 = pnand %p492_p5, %p128_p7  ;;  %s140_s22 = sshll.u32 %s773_s21, 4  ;;  %s846_s22 = int_to_ptr.vmem [resolvable:$true] %s140_s22 }
  0x10   : > { %s858_s24 = sadd.s32 1, %s771_s15   ;;  %s31_s25 = sadd.s32 1, %s767_s14 }
  0x11   : > { %s1066_s20 = scalar_select %p842_p8, 1, 0 }
  0x12   : > { %p542_p9 = pneg %p842_p8  ;;  %s28_s26 = ssub.s32 %s771_s15, %s858_s24 }
  0x13   : > { %s611_s29 = scalar_lea.hbm %s1058_s1, 1024 }
  0x14   : > { %p853_p11 = pnand %p542_p9, %p1061_p1  ;;  %p612_p12 = scmp.ne.s32.totalorder %s1058_s1, %s611_s29 }
  0x15   : > { %p618_p5 = scmp.lt.u32.totalorder %s611_s29, %s1058_s1 }
  0x16   : > { %p613_p13 = pneg %p853_p11 }
  0x18   : > { %p614_p0 = pnand %p613_p13, %p612_p12 }
  0x1a   : > { %p615_p3 = pneg %p614_p0 }
  0x1c   : > { %p620_p7 = pnand %p618_p5, %p615_p3 }
  0x1e   : > { %623 = shalt.err (!%p620_p7)
}
  0x1f   : > { %s624_s7 = scalar_lea.vmem %s846_s22, 1024  ;;  %p632_p2 = scmp.lt.s32.totalorder %s846_s22, %s846_s22 }
  0x20   : > { %p625_p9 = scmp.ne.s32.totalorder %s846_s22, %s624_s7  ;;  %p633_p6 = scmp.lt.s32.totalorder %s624_s7, %s624_s7 }
  0x22   : > { %p627_p10 = pnand %p625_p9, %p613_p13  ;;  %p634_p4 = por %p633_p6, %p632_p2 }
  0x24   : > { %p628_p1 = pneg %p627_p10 }
  0x26   : > { %p635_p8 = pnand %p634_p4, %p628_p1 }
  0x28   : > { %638 = shalt.err (!%p635_p8)
}
  0x29   : > { %s774_s8 = smov 128   ;;  %s775_s9 = smov 8  }
  0x2a   : > { %545 = dma.hbm_to_vmem [thread:$0]  (!%p853_p11), %s1058_s1, 1024, %s846_s22, [#allocation6], %s774_s8, %s774_s8, %s775_s9  }
  0x2b   : > { %p29_p1 = scmp.eq.s32.totalorder %s28_s26, 0  ;;  %p38_p2 = scmp.ne.s32.totalorder %s767_s14, %s763_s13 }
  0x2c   : > { %p39_p4 = scmp.eq.s32.totalorder %s771_s15, 0  ;;  %p558_p6 = scmp.lt.s32.totalorder %s771_s15, 2 }
  0x2d   : > { %s892_s17 = scalar_select %p29_p1, %s767_s14, %s31_s25  }
  0x2e   : > { %p40_p8 = por %p39_p4, %p38_p2  ;;  %p1068_p10 = scmp.eq.s32.totalorder %s823_s16, 1 }
  0x2f   : > { %s154_s23 = sand.u32 1, %s767_s14   ;;  %s521_s27 = sshll.u32 %s771_s15, 9 }
  0x30   : > { %p896_p12 = por %p1068_p10, %p38_p2  ;;  %s495_s28 = sshll.u32 %s154_s23, 5 }
  0x31   : > { %s905_s4 = scalar_lea.hbm %s1057_s0, %s521_s27  ;;  %s158_s22 = scalar_lea.vmem [#allocation2], %s495_s28 }
  0x32   : > { %s165_s25 = sshll.u32 %s158_s22, 4  ;;  %p907_p11 = pnand %p558_p6, %p40_p8  ;;  %s911_s25 = int_to_ptr.vmem [resolvable:$true] %s165_s25 }
  0x33   : > { %s913_s5 = scalar_lea.sflag [#allocation3], %s154_s23  ;;  %s639_s6 = scalar_lea.hbm %s905_s4, 512 }
  0x34   : > { %p640_p13 = scmp.ne.s32.totalorder %s905_s4, %s639_s6  ;;  %p641_p0 = pneg %p907_p11 }
  0x35   : > { %s644_s11 = scalar_lea.hbm %s1057_s0, 1024  ;;  %p645_p7 = scmp.lt.u32.totalorder %s905_s4, %s1057_s0 }
  0x36   : > { %p642_p3 = pnand %p641_p0, %p640_p13  ;;  %p646_p9 = scmp.lt.u32.totalorder %s644_s11, %s639_s6 }
  0x37   : > { %p648_p2 = scmp.lt.u32.totalorder %s639_s6, %s905_s4 }
  0x38   : > { %p643_p5 = pneg %p642_p3  ;;  %p647_p1 = por %p646_p9, %p645_p7 }
  0x3a   : > { %p649_p4 = por %p648_p2, %p647_p1 }
  0x3c   : > { %p650_p6 = pnand %p649_p4, %p643_p5 }
  0x3e   : > { %653 = shalt.err (!%p650_p6)
}
  0x3f   : > { %s654_s23 = scalar_lea.vmem %s911_s25, 512  ;;  %s776_s29 = smov [#allocation2]  }
  0x40   : > { %p655_p8 = scmp.ne.s32.totalorder %s911_s25, %s654_s23  ;;  %s659_s30 = sshll.u32 %s776_s29, 4  ;;  %s660_s30 = int_to_ptr.vmem [resolvable:$false] %s659_s30 }
  0x41   : > { %s661_s22 = scalar_lea.vmem %s660_s30, 1024  ;;  %p662_p3 = scmp.lt.s32.totalorder %s911_s25, %s660_s30 }
  0x42   : > { %p657_p10 = pnand %p655_p8, %p641_p0  ;;  %p663_p7 = scmp.lt.s32.totalorder %s661_s22, %s654_s23 }
  0x44   : > { %p658_p13 = pneg %p657_p10  ;;  %p664_p9 = por %p663_p7, %p662_p3 }
  0x46   : > { %p665_p1 = pnand %p664_p9, %p658_p13 }
  0x48   : > { %668 = shalt.err (!%p665_p1)
}
  0x49   : > { %549 = dma.hbm_to_vmem [thread:$0]  (!%p907_p11), %s905_s4, 512, %s911_s25, %s913_s5, %s774_s8, %s774_s8, %s775_s9  }
  0x4a   : > { %p1071_p0 = scmp.ne.s32.totalorder %s1066_s20, 0 }
  0x4b   : > { %s947_s6 = sand.u32 (!%p1071_p0), 1, %s763_s13   ;;  %p1072_p5 = scmp.ne.s32.totalorder (!%p1071_p0), %s1064_s18, 0 }
  0x4c   : > { %177 = sbr.rel (%p1071_p0) target bundleno = 358 (0x166), region = 28  ;;  %s950_s7 = sshll.u32 (!%p1071_p0), %s947_s6, 5 }
  0x4d   : > { %s180_s26 = scalar_lea.sflag (!%p1071_p0), [#allocation3], %s947_s6  ;;  %s954_s10 = scalar_lea.vmem (!%p1071_p0), [#allocation2], %s950_s7 }
  0x53   : > { %742 = dma.done.wait (%p1072_p5), %s180_s26, 512  }
  0x54   : > { %744 = vsyncadd (%p1072_p5), %s180_s26, 4294966784  ;;  %p1073_p11 = scmp.eq.s32.totalorder %s823_s16, 0 }
  0x56   : > { %746 = dma.done.wait (%p1073_p11), [#allocation6], 1024   ;;  %p1074_p2 = pmov %p1073_p11 }
  0x57   : > { %v777_v0 = vmov 0   ;;  %v599_v1 = vld [vmem:[#allocation5 + $0x4] ss:$8 sps:$4 sm:$0xff]   ;;  %v601_v2 = vld [vmem:[#allocation5] ss:$8 sps:$4 sm:$0xff]   ;;  %v221_v11 = vld [vmem:[%s954_s10 + $0x10] sm:$0xff] }
  0x58   : > { %748 = vsyncadd (%p1074_p2), [#allocation6], 4294966272  ;;  %312 = vmatprep.mubr.bf16.mxu0 %v777_v0  ;;  %322 = vmatprep.mubr.bf16.mxu1 %v777_v0  ;;  %v602_v3 = vld [vmem:[#allocation5 + $0x14] ss:$8 sps:$4 sm:$0xff]   ;;  %v604_v4 = vld [vmem:[#allocation5 + $0x10] ss:$8 sps:$4 sm:$0xff]  }
  0x59   : > { %280 = vmatprep.subr.bf16.mxu0 %v599_v1  ;;  %524 = vmatprep.subr.bf16.mxu1 %v599_v1  ;;  %v605_v5 = vld [vmem:[#allocation5 + $0x24] ss:$8 sps:$4 sm:$0xff]   ;;  %v607_v6 = vld [vmem:[#allocation5 + $0x20] ss:$8 sps:$4 sm:$0xff]   ;;  %v608_v7 = vld [vmem:[#allocation5 + $0x34] ss:$8 sps:$4 sm:$0xff]  }
  0x5a   : > { %281 = vmatpush1.bf16.msra.mxu0 %v601_v2  ;;  %528 = vmatpush1.bf16.msra.mxu1 %v601_v2  ;;  %v610_v8 = vld [vmem:[#allocation5 + $0x30] ss:$8 sps:$4 sm:$0xff]   ;;  %v219_v9 = vld [vmem:[%s954_s10] sm:$0xff]  ;;  %v220_v10 = vld [vmem:[%s954_s10 + $0x8] sm:$0xff]  ;;  %vm273_vm0 = vcmask 523264   ;;  %s207_s18 = scalar_lea.vmem [#allocation7], %s950_s7 }
  0x5b   : > { %282 = vmatprep.subr.bf16.mxu0 %v602_v3  ;;  %525 = vmatprep.subr.bf16.mxu1 %v602_v3  ;;  %v222_v12 = vld [vmem:[%s954_s10 + $0x18] sm:$0xff]  ;;  %v223_v13 = vpack.c.bf16 %v220_v10, %v219_v9  ;;  %s360_s20 = sshll.u32 %s207_s18, 4  ;;  %s214_s8 = scalar_lea.vmem [#allocation8], %s950_s7  ;;  %s971_s20 = int_to_ptr.vmem [resolvable:$true] %s360_s20 }
  0x5c   : > { %v224_v14 = vpack.c.bf16 %v222_v12, %v221_v11  ;;  %s376_s9 = sshll.u32 %s214_s8, 4  ;;  %s522_s4 = sshll.u32 %s823_s16, 9  ;;  %s973_s9 = int_to_ptr.vmem [resolvable:$true] %s376_s9 }
  0x5d   : > { %s978_s11 = scalar_lea.hbm %s1059_s2, %s522_s4  ;;  %s983_s28 = scalar_lea.hbm %s1060_s3, %s522_s4 }
  0x5e   : > { %283 = vmatpush1.bf16.msra.mxu0 %v604_v4  ;;  %529 = vmatpush1.bf16.msra.mxu1 %v604_v4  ;;  %s342_s23 = scalar_lea.sflag [#allocation4], %s947_s6  ;;  %s669_s29 = scalar_lea.vmem %s971_s20, 512 }
  0x5f   : > { %284 = vmatprep.subr.bf16.mxu0 %v605_v5  ;;  %526 = vmatprep.subr.bf16.mxu1 %v605_v5  ;;  %p670_p4 = scmp.ne.s32.totalorder %s971_s20, %s669_s29  ;;  %s778_s30 = smov [#allocation7]  }
  0x60   : > { %s673_s22 = sshll.u32 %s778_s30, 4  ;;  %s674_s22 = int_to_ptr.vmem [resolvable:$false] %s673_s22 }
  0x61   : > { %p671_p6 = pnand %p670_p4, %p896_p12  ;;  %s675_s7 = scalar_lea.vmem %s674_s22, 1024 }
  0x62   : > { %285 = vmatpush1.bf16.msra.mxu0 %v607_v6  ;;  %530 = vmatpush1.bf16.msra.mxu1 %v607_v6  ;;  %p676_p10 = scmp.lt.s32.totalorder %s971_s20, %s674_s22  ;;  %p677_p13 = scmp.lt.s32.totalorder %s675_s7, %s669_s29 }
  0x63   : > { %286 = vmatprep.subr.bf16.mxu0 %v608_v7  ;;  %527 = vmatprep.subr.bf16.mxu1 %v608_v7  ;;  %p672_p8 = pneg %p671_p6 }
  0x64   : > { %p678_p3 = por %p677_p13, %p676_p10 }
  0x66   : > { %287 = vmatpush1.bf16.msra.mxu0 %v610_v8  ;;  %531 = vmatpush1.bf16.msra.mxu1 %v610_v8  ;;  %p679_p7 = pnand %p678_p3, %p672_p8 }
  0x69   : > { %511 = vmatmul.mubr.msk.bf16.vlgmr.msra.gmra.mrb[0].mxu0 %vm273_vm0, %v223_v13  ;;  %512 = vmatmul.mubr.msk.bf16.vlgmr.msra.gmra.mrb[0].mxu1 %vm273_vm0, %v224_v14 }
 0x13c   : > { %v314_v15 = vpop.f32.mrb[0].mxu0  ;;  %v324_v16 = vpop.f32.mrb[0].mxu1 }
 0x13d   : > { %333 = vst [vmem:[%s207_s18] sm:$0xff] %v314_v15  ;;  %335 = vst [vmem:[%s207_s18 + $0x10] sm:$0xff] %v324_v16  ;;  %v316_v17 = vpop.f32.mrb[1].mxu0  ;;  %v326_v18 = vpop.f32.mrb[1].mxu1 }
 0x13e   : > { %337 = vst [vmem:[%s214_s8] sm:$0xff] %v316_v17  ;;  %339 = vst [vmem:[%s214_s8 + $0x10] sm:$0xff] %v326_v18  ;;  %v318_v19 = vpop.f32.mrb[2].mxu0  ;;  %v328_v20 = vpop.f32.mrb[2].mxu1 }
 0x13f   : > { %334 = vst [vmem:[%s207_s18 + $0x8] sm:$0xff] %v318_v19  ;;  %336 = vst [vmem:[%s207_s18 + $0x18] sm:$0xff] %v328_v20  ;;  %v320_v21 = vpop.f32.mrb[3].mxu0  ;;  %v330_v22 = vpop.f32.mrb[3].mxu1 }
 0x140   : > { %338 = vst [vmem:[%s214_s8 + $0x8] sm:$0xff] %v320_v21  ;;  %340 = vst [vmem:[%s214_s8 + $0x18] sm:$0xff] %v330_v22 }
 0x141   : > { %682 = shalt.err (!%p679_p7)
}
 0x142   : > { %s683_s26 = scalar_lea.hbm %s978_s11, 512  ;;  %s687_s8 = scalar_lea.hbm %s1059_s2, 1024 }
 0x143   : > { %p684_p9 = scmp.ne.s32.totalorder %s978_s11, %s683_s26  ;;  %p688_p5 = scmp.lt.u32.totalorder %s978_s11, %s1059_s2 }
 0x144   : > { %p689_p11 = scmp.lt.u32.totalorder %s687_s8, %s683_s26  ;;  %p691_p4 = scmp.lt.u32.totalorder %s683_s26, %s978_s11 }
 0x145   : > { %p685_p1 = pnand %p684_p9, %p896_p12 }
 0x146   : > { %p690_p2 = por %p689_p11, %p688_p5 }
 0x147   : > { %p686_p0 = pneg %p685_p1 }
 0x148   : > { %p692_p6 = por %p691_p4, %p690_p2 }
 0x14a   : > { %p693_p8 = pnand %p692_p6, %p686_p0 }
 0x14c   : > { %696 = shalt.err (!%p693_p8)
}
 0x14d   : > { %s779_s5 = smov 128   ;;  %s780_s16 = smov 8  }
 0x14e   : > { %538 = dma.vmem_to_hbm [thread:$0]  (%p896_p12), %s971_s20, 512, %s978_s11, %s342_s23, %s779_s5, %s779_s5, %s780_s16  }
 0x14f   : > { %s347_s27 = scalar_lea.sflag [#allocation9], %s947_s6  ;;  %s697_s29 = scalar_lea.vmem %s973_s9, 512 }
 0x150   : > { %p698_p10 = scmp.ne.s32.totalorder %s973_s9, %s697_s29  ;;  %s781_s30 = smov [#allocation8]  }
 0x151   : > { %s701_s22 = sshll.u32 %s781_s30, 4  ;;  %s702_s22 = int_to_ptr.vmem [resolvable:$false] %s701_s22 }
 0x152   : > { %p699_p13 = pnand %p698_p10, %p896_p12  ;;  %s703_s7 = scalar_lea.vmem %s702_s22, 1024 }
 0x153   : > { %p704_p7 = scmp.lt.s32.totalorder %s973_s9, %s702_s22  ;;  %p705_p9 = scmp.lt.s32.totalorder %s703_s7, %s697_s29 }
 0x154   : > { %p700_p3 = pneg %p699_p13 }
 0x155   : > { %p706_p1 = por %p705_p9, %p704_p7 }
 0x157   : > { %p707_p0 = pnand %p706_p1, %p700_p3 }
 0x159   : > { %710 = shalt.err (!%p707_p0)
}
 0x15a   : > { %s711_s20 = scalar_lea.hbm %s983_s28, 512  ;;  %s715_s26 = scalar_lea.hbm %s1060_s3, 1024 }
 0x15b   : > { %p712_p5 = scmp.ne.s32.totalorder %s983_s28, %s711_s20  ;;  %p716_p4 = scmp.lt.u32.totalorder %s983_s28, %s1060_s3 }
 0x15c   : > { %p717_p6 = scmp.lt.u32.totalorder %s715_s26, %s711_s20  ;;  %p719_p10 = scmp.lt.u32.totalorder %s711_s20, %s983_s28 }
 0x15d   : > { %p713_p11 = pnand %p712_p5, %p896_p12 }
 0x15e   : > { %p718_p8 = por %p717_p6, %p716_p4 }
 0x15f   : > { %p714_p2 = pneg %p713_p11 }
 0x160   : > { %p720_p13 = por %p719_p10, %p718_p8 }
 0x162   : > { %p721_p3 = pnand %p720_p13, %p714_p2 }
 0x164   : > { %724 = shalt.err (!%p721_p3)
}
 0x165   : > { %539 = dma.vmem_to_hbm [thread:$0]  (%p896_p12), %s973_s9, 512, %s983_s28, %s347_s27, %s779_s5, %s779_s5, %s780_s16  }
 0x166 PF: > { %s391_s8 = sand.u32 1, %s759_s12   ;;  %p1075_p7 = scmp.ne.s32.totalorder %s1065_s19, 0 }
 0x167   : > { %p1076_p9 = scmp.ge.s32.totalorder %s771_s15, 2  ;;  %s392_s4 = scalar_lea.sflag [#allocation4], %s391_s8 }
 0x169   : > { %p551_p1 = pnand %p1076_p9, %p1075_p7 }
 0x16b   : > { %750 = dma.done.wait (!%p551_p1), %s392_s4, 512  }
 0x16c   : > { %752 = vsyncadd (!%p551_p1), %s392_s4, 4294966784  ;;  %s401_s21 = scalar_lea.sflag [#allocation9], %s391_s8 }
 0x16d   : > { %754 = dma.done.wait (!%p551_p1), %s401_s21, 512  }
 0x16e   : > { %756 = vsyncadd (!%p551_p1), %s401_s21, 4294966784  ;;  %p21_p12 = scmp.ge.s32.totalorder %s858_s24, 4   ;;  %s1077_s12 = smov %s763_s13 }
 0x16f   : > { %s1078_s13 = smov %s767_s14  ;;  %s1079_s14 = smov %s892_s17 }
 0x170   : > { %s1080_s15 = smov %s858_s24  ;;  %23 = sbr.rel (!%p21_p12) target bundleno = 8 (0x8), region = 94 }
 0x177   :  { %406 = vsyncpa [#allocation3], 1 }
 0x178   :  { %408 = vsyncpa [#allocation3 + $0x1], 1 }
 0x179   :  { %409 = vsyncpa [#allocation6], 1 }
 0x17a   :  { %410 = vsyncpa [#allocation4], 1 }
 0x17b   :  { %412 = vsyncpa [#allocation4 + $0x1], 1 }
 0x17c   :  { %413 = vsyncpa [#allocation9], 1 }
 0x17d   :  { %415 = vsyncpa [#allocation9 + $0x1], 1 }

</bundles_post_ra>
